<compile_context>
chip_gen: v5e
topology: v5e:2x2
jax: 0.10.0
libtpu: 0.0.40
codegen_flags: <defaults>
</compile_context>

<pallas_src>
import functools

import jax
import jax.numpy as jnp
from jax.experimental import pallas as pl
from jax.experimental.pallas import tpu as pltpu

HIDDEN = 64
LN_EPS = 1e-5


def _round_up(x, m):
    return ((x + m - 1) // m) * m


def _round_down(x, m):
    return (x // m) * m


def _vmem_capacity_bytes():
    """Physical VMEM per core; conservative 64 MiB (v7x) fallback if the query fails."""
    try:
        info = pltpu.get_tpu_info()
        cap = getattr(info, "vmem_capacity_bytes", None)
        if cap:
            return int(cap)
    except Exception:
        pass
    return 64 * 1024 * 1024


def _epilogue_f32(h, b_ref, g_ref, beta_ref):
    """bias -> ReLU -> LayerNorm(64), all in f32 (PyTorch semantics)."""
    h = h + b_ref[...].astype(jnp.float32)
    h = jnp.maximum(h, 0.0)  # use_ReLU=True
    mean = jnp.mean(h, axis=-1, keepdims=True)
    var = jnp.mean((h - mean) * (h - mean), axis=-1, keepdims=True)  # biased variance
    xhat = (h - mean) * jax.lax.rsqrt(var + LN_EPS)
    return xhat * g_ref[...].astype(jnp.float32) + beta_ref[...].astype(jnp.float32)


# --------------------------- kernels ---------------------------

def phi_mono_kernel(x_ref, w_ref, b_ref, g_ref, beta_ref, o_ref):
    # Single K step: no accumulator scratch, dot -> epilogue -> direct store.
    h = jnp.dot(x_ref[...], w_ref[...], preferred_element_type=jnp.float32)
    o_ref[...] = _epilogue_f32(h, b_ref, g_ref, beta_ref).astype(o_ref.dtype)


def phi_ktiled_kernel(x_ref, w_ref, b_ref, g_ref, beta_ref, o_ref, acc_ref, *, d_in, tk):
    k = pl.program_id(1)

    @pl.when(k == 0)
    def _init():
        acc_ref[...] = jnp.zeros_like(acc_ref)

    xv = x_ref[...]
    if d_in % tk:
        # x is NOT padded in HBM: the last K block reads garbage past D_in, so zero
        # those columns in-kernel (the matching weight rows are zero-padded).
        col = jax.lax.broadcasted_iota(jnp.int32, xv.shape, 1)
        xv = jnp.where(col < (d_in - k * tk), xv, jnp.zeros_like(xv))

    acc_ref[...] += jnp.dot(xv, w_ref[...], preferred_element_type=jnp.float32)

    @pl.when(k == pl.num_programs(1) - 1)
    def _finalize():
        o_ref[...] = _epilogue_f32(acc_ref[...], b_ref, g_ref, beta_ref).astype(o_ref.dtype)


# --------------------------- wrapper ---------------------------

def phi_layer(x, w_t, b, gamma, beta, *, force_tk=None):
    """x: (B, D_in); w_t: (D_in, 64) (pre-transposed torch weight); b/gamma/beta: (1, 64).

    Returns (B, 64) in x.dtype.  `force_tk` (multiple of 128) forces the streamed-K path
    (used for testing the accumulator/masking path at small shapes).
    """
    B, D_in = x.shape
    assert w_t.shape == (D_in, HIDDEN)
    if force_tk is not None:
        assert force_tk % 128 == 0

    x_isz = jnp.dtype(x.dtype).itemsize
    o_isz = x_isz
    vmem_cap = _vmem_capacity_bytes()
    budget = int(vmem_cap * 0.6)                       # working-set target
    vmem_limit = max(32 << 20, min(int(vmem_cap * 0.85), budget + (16 << 20)))

    b8 = _round_up(max(B, 1), 8)

    # --- monolithic-K candidate: 2x-buffered x + 2x-buffered weight + 2x-buffered out
    #     (out VMEM buffer is lane-padded to 128). ---
    mono_fixed = 2 * D_in * HIDDEN * x_isz
    mono_per_row = 2 * D_in * x_isz + 2 * 128 * o_isz
    mono_cap = (budget - mono_fixed) // mono_per_row if budget > mono_fixed else 0
    tb_mono = min(b8, 4096, _round_down(int(mono_cap), 8))

    if force_tk is None and tb_mono >= min(b8, 512):
        # ---------------- monolithic-K path ----------------
        tb = max(8, tb_mono)
        n_bt = pl.cdiv(B, tb)
        return pl.pallas_call(
            phi_mono_kernel,
            out_shape=jax.ShapeDtypeStruct((B, HIDDEN), x.dtype),
            grid_spec=pltpu.PrefetchScalarGridSpec(
                num_scalar_prefetch=0,
                grid=(n_bt,),
                in_specs=[
                    pl.BlockSpec((tb, D_in), lambda i: (i, 0)),       # x tile (ragged tail OK)
                    pl.BlockSpec((D_in, HIDDEN), lambda i: (0, 0)),   # weight (VMEM-resident)
                    pl.BlockSpec((1, HIDDEN), lambda i: (0, 0)),      # Linear bias
                    pl.BlockSpec((1, HIDDEN), lambda i: (0, 0)),      # LN gamma
                    pl.BlockSpec((1, HIDDEN), lambda i: (0, 0)),      # LN beta
                ],
                out_specs=pl.BlockSpec((tb, HIDDEN), lambda i: (i, 0)),
            ),
            compiler_params=pltpu.CompilerParams(
                dimension_semantics=("parallel",),
                vmem_limit_bytes=vmem_limit,
            ),
        )(x, w_t, b, gamma, beta)

    # ---------------- streamed-K path (very large D_in) ----------------
    tk = force_tk if force_tk is not None else (2048 if x_isz <= 2 else 1024)
    tk = min(tk, _round_up(D_in, 128))
    kt_fixed = 2 * tk * HIDDEN * x_isz
    kt_per_row = 2 * tk * x_isz + HIDDEN * 4 + 2 * 128 * o_isz
    kt_cap = (budget - kt_fixed) // kt_per_row if budget > kt_fixed else 8
    tb = max(8, min(b8, 4096, _round_down(int(kt_cap), 8)))

    n_bt = pl.cdiv(B, tb)
    n_kt = pl.cdiv(D_in, tk)
    d_pad = n_kt * tk

    # Only the tiny (D_in, 64) weight is zero-padded to the K-tile boundary.
    w_p = jnp.pad(w_t, ((0, d_pad - D_in), (0, 0))) if d_pad != D_in else w_t

    kernel = functools.partial(phi_ktiled_kernel, d_in=D_in, tk=tk)
    return pl.pallas_call(
        kernel,
        out_shape=jax.ShapeDtypeStruct((B, HIDDEN), x.dtype),
        grid_spec=pltpu.PrefetchScalarGridSpec(
            num_scalar_prefetch=0,
            grid=(n_bt, n_kt),
            in_specs=[
                pl.BlockSpec((tb, tk), lambda i, k: (i, k)),        # x tile (ragged tails OK)
                pl.BlockSpec((tk, HIDDEN), lambda i, k: (k, 0)),    # weight tile
                pl.BlockSpec((1, HIDDEN), lambda i, k: (0, 0)),     # Linear bias
                pl.BlockSpec((1, HIDDEN), lambda i, k: (0, 0)),     # LN gamma
                pl.BlockSpec((1, HIDDEN), lambda i, k: (0, 0)),     # LN beta
            ],
            out_specs=pl.BlockSpec((tb, HIDDEN), lambda i, k: (i, 0)),
            scratch_shapes=[pltpu.VMEM((tb, HIDDEN), jnp.float32)],
        ),
        compiler_params=pltpu.CompilerParams(
            dimension_semantics=("parallel", "arbitrary"),
            vmem_limit_bytes=vmem_limit,
        ),
    )(x, w_p, b, gamma, beta)


def phi_layer_ref(x, w_t, b, gamma, beta):
    h = x.astype(jnp.float32) @ w_t.astype(jnp.float32) + b
    h = jnp.maximum(h, 0.0)
    mean = jnp.mean(h, axis=-1, keepdims=True)
    var = jnp.mean((h - mean) ** 2, axis=-1, keepdims=True)
    xhat = (h - mean) * jax.lax.rsqrt(var + LN_EPS)
    return xhat * gamma + beta


def _make_params(key, d_in):
    # Deterministic parameter init (synthetic stand-in for orthogonal init w/ relu gain).
    gain = jnp.sqrt(2.0)  # nn.init.calculate_gain('relu')
    w = jax.random.normal(key, (HIDDEN, d_in), dtype=jnp.float32)
    w = w * (gain / jnp.sqrt(jnp.float32(d_in)))     # torch Linear weight layout (out, in)
    w_t = w.T                                        # (D_in, 64) for the kernel
    b = jnp.zeros((1, HIDDEN), dtype=jnp.float32)    # Linear bias init = 0
    gamma = jnp.ones((1, HIDDEN), dtype=jnp.float32) # LayerNorm weight init = 1
    beta = jnp.zeros((1, HIDDEN), dtype=jnp.float32) # LayerNorm bias init = 0
    return w_t, b, gamma, beta


if __name__ == "__main__":
    key = jax.random.PRNGKey(0)
    k_x1, k_w1, k_x2, k_w2 = jax.random.split(key, 4)

    # ---- test 1: monolithic-K path (the common case) ----
    B1, D1 = 16, 32
    x1 = jax.random.normal(k_x1, (B1, D1), dtype=jnp.float32)
    w_t1, b1, g1, be1 = _make_params(k_w1, D1)

    out1 = jax.block_until_ready(phi_layer(x1, w_t1, b1, g1, be1))
    ref1 = phi_layer_ref(x1, w_t1, b1, g1, be1)
    assert out1.shape == (B1, HIDDEN)
    assert jnp.allclose(out1, ref1, atol=1e-4, rtol=1e-4), "mono path mismatch vs reference"

    # ---- test 2: streamed-K path (forced small tk to exercise the accumulator,
    #      the masked K tail and the ragged batch tail) ----
    B2, D2 = 20, 160
    x2 = jax.random.normal(k_x2, (B2, D2), dtype=jnp.float32)
    w_t2, b2, g2, be2 = _make_params(k_w2, D2)

    out2 = jax.block_until_ready(phi_layer(x2, w_t2, b2, g2, be2, force_tk=128))
    ref2 = phi_layer_ref(x2, w_t2, b2, g2, be2)
    assert out2.shape == (B2, HIDDEN)
    assert jnp.allclose(out2, ref2, atol=1e-4, rtol=1e-4), "streamed-K path mismatch vs reference"

    print("KERNEL_OK")
</pallas_src>

<mosaic_0001>
module attributes {stable_mosaic.version = 11 : i64} {
  func.func @phi_mono_kernel(%arg0: i32, %arg1: memref<16x32xf32, #tpu.memory_space<vmem>>, %arg2: memref<32x64xf32, #tpu.memory_space<vmem>>, %arg3: memref<1x64xf32, #tpu.memory_space<vmem>>, %arg4: memref<1x64xf32, #tpu.memory_space<vmem>>, %arg5: memref<1x64xf32, #tpu.memory_space<vmem>>, %arg6: memref<16x64xf32, #tpu.memory_space<vmem>>) attributes {dimension_semantics = [#tpu.dimension_semantics<parallel>], iteration_bounds = array<i64: 1>, scalar_prefetch = 0 : i64, scratch_operands = 0 : i64, tpu.core_type = #tpu.core_type<tc>, window_params = [{transform_indices = @transform_0, window_bounds = array<i64: 16, 32>}, {pipeline_mode = #tpu.pipeline_mode<synchronous>, transform_indices = @transform_1, window_bounds = array<i64: 32, 64>}, {pipeline_mode = #tpu.pipeline_mode<synchronous>, transform_indices = @transform_2, window_bounds = array<i64: 1, 64>}, {pipeline_mode = #tpu.pipeline_mode<synchronous>, transform_indices = @transform_3, window_bounds = array<i64: 1, 64>}, {pipeline_mode = #tpu.pipeline_mode<synchronous>, transform_indices = @transform_4, window_bounds = array<i64: 1, 64>}, {transform_indices = @transform_5, window_bounds = array<i64: 16, 64>}]} {
    %c0 = arith.constant 0 : index
    %c0_0 = arith.constant 0 : index
    %0 = vector.load %arg1[%c0, %c0_0] : memref<16x32xf32, #tpu.memory_space<vmem>>, vector<16x32xf32>
    %c0_1 = arith.constant 0 : index
    %c0_2 = arith.constant 0 : index
    %1 = vector.load %arg2[%c0_1, %c0_2] : memref<32x64xf32, #tpu.memory_space<vmem>>, vector<32x64xf32>
    %cst = arith.constant dense<0.000000e+00> : vector<16x64xf32>
    %2 = tpu.matmul %0, %1, %cst {dimension_numbers = #tpu.dot_dimension_numbers<[1], [0], [0], [1], [0, 0, 1, 1], [], []>} : vector<16x32xf32>, vector<32x64xf32>, vector<16x64xf32> -> vector<16x64xf32>
    %c0_3 = arith.constant 0 : index
    %c0_4 = arith.constant 0 : index
    %3 = vector.load %arg3[%c0_3, %c0_4] : memref<1x64xf32, #tpu.memory_space<vmem>>, vector<1x64xf32>
    %4 = vector.broadcast %3 : vector<1x64xf32> to vector<16x64xf32>
    %5 = arith.addf %2, %4 : vector<16x64xf32>
    %cst_5 = arith.constant 0.000000e+00 : f32
    %6 = vector.broadcast %cst_5 : f32 to vector<16x64xf32>
    %7 = arith.maximumf %5, %6 : vector<16x64xf32>
    %cst_6 = arith.constant dense<0.000000e+00> : vector<16xf32>
    %8 = vector.multi_reduction <add>, %7, %cst_6 [1] : vector<16x64xf32> to vector<16xf32>
    %9 = vector.shape_cast %8 : vector<16xf32> to vector<16x1xf32>
    %cst_7 = arith.constant 6.400000e+01 : f32
    %10 = vector.broadcast %cst_7 : f32 to vector<16x1xf32>
    %11 = arith.divf %9, %10 : vector<16x1xf32>
    %12 = vector.broadcast %11 : vector<16x1xf32> to vector<16x64xf32>
    %13 = arith.subf %7, %12 : vector<16x64xf32>
    %14 = vector.broadcast %11 : vector<16x1xf32> to vector<16x64xf32>
    %15 = arith.subf %7, %14 : vector<16x64xf32>
    %16 = arith.mulf %13, %15 : vector<16x64xf32>
    %cst_8 = arith.constant dense<0.000000e+00> : vector<16xf32>
    %17 = vector.multi_reduction <add>, %16, %cst_8 [1] : vector<16x64xf32> to vector<16xf32>
    %18 = vector.shape_cast %17 : vector<16xf32> to vector<16x1xf32>
    %cst_9 = arith.constant 6.400000e+01 : f32
    %19 = vector.broadcast %cst_9 : f32 to vector<16x1xf32>
    %20 = arith.divf %18, %19 : vector<16x1xf32>
    %21 = vector.broadcast %11 : vector<16x1xf32> to vector<16x64xf32>
    %22 = arith.subf %7, %21 : vector<16x64xf32>
    %cst_10 = arith.constant 9.99999974E-6 : f32
    %23 = vector.broadcast %cst_10 : f32 to vector<16x1xf32>
    %24 = arith.addf %20, %23 : vector<16x1xf32>
    %25 = math.rsqrt %24 : vector<16x1xf32>
    %26 = vector.broadcast %25 : vector<16x1xf32> to vector<16x64xf32>
    %27 = arith.mulf %22, %26 : vector<16x64xf32>
    %c0_11 = arith.constant 0 : index
    %c0_12 = arith.constant 0 : index
    %28 = vector.load %arg4[%c0_11, %c0_12] : memref<1x64xf32, #tpu.memory_space<vmem>>, vector<1x64xf32>
    %29 = vector.broadcast %28 : vector<1x64xf32> to vector<16x64xf32>
    %30 = arith.mulf %27, %29 : vector<16x64xf32>
    %c0_13 = arith.constant 0 : index
    %c0_14 = arith.constant 0 : index
    %31 = vector.load %arg5[%c0_13, %c0_14] : memref<1x64xf32, #tpu.memory_space<vmem>>, vector<1x64xf32>
    %32 = vector.broadcast %31 : vector<1x64xf32> to vector<16x64xf32>
    %33 = arith.addf %30, %32 : vector<16x64xf32>
    %c0_15 = arith.constant 0 : index
    %c0_16 = arith.constant 0 : index
    %34 = vector.load %arg6[%c0_15, %c0_16] : memref<16x64xf32, #tpu.memory_space<vmem>>, vector<16x64xf32>
    tpu.vector_store %arg6[%c0_15, %c0_16], %33 {strides = array<i32>} : memref<16x64xf32, #tpu.memory_space<vmem>>, vector<16x64xf32>,
    return
  }
  func.func @transform_0(%arg0: i32) -> (i32, i32) {
    %c0_i32 = arith.constant 0 : i32
    %c0_i32_0 = arith.constant 0 : i32
    return %arg0, %c0_i32 : i32, i32
  }
  func.func @transform_1(%arg0: i32) -> (i32, i32) {
    %c0_i32 = arith.constant 0 : i32
    %c0_i32_0 = arith.constant 0 : i32
    %c0_i32_1 = arith.constant 0 : i32
    return %c0_i32, %c0_i32_0 : i32, i32
  }
  func.func @transform_2(%arg0: i32) -> (i32, i32) {
    %c0_i32 = arith.constant 0 : i32
    %c0_i32_0 = arith.constant 0 : i32
    %c0_i32_1 = arith.constant 0 : i32
    return %c0_i32, %c0_i32_0 : i32, i32
  }
  func.func @transform_3(%arg0: i32) -> (i32, i32) {
    %c0_i32 = arith.constant 0 : i32
    %c0_i32_0 = arith.constant 0 : i32
    %c0_i32_1 = arith.constant 0 : i32
    return %c0_i32, %c0_i32_0 : i32, i32
  }
  func.func @transform_4(%arg0: i32) -> (i32, i32) {
    %c0_i32 = arith.constant 0 : i32
    %c0_i32_0 = arith.constant 0 : i32
    %c0_i32_1 = arith.constant 0 : i32
    return %c0_i32, %c0_i32_0 : i32, i32
  }
  func.func @transform_5(%arg0: i32) -> (i32, i32) {
    %c0_i32 = arith.constant 0 : i32
    %c0_i32_0 = arith.constant 0 : i32
    return %arg0, %c0_i32 : i32, i32
  }
}

</mosaic_0001>

<bundles_post_ra>
// kernel: tpu_custom_call.1
= control target key start
LH: loop header
LB: loop body
LE: loop exit
PB: predicated region body
PF: predicated region fallthrough
CT: control target
= control target key end

     0   :  { %10 = vsyncpa [#allocation3], 0  ;;  %s349_s0 = inlined_call_operand.hbm [shape: f32[16,32], index: 0, kind: input, shape index: {}]   ;;  %s350_s1 = inlined_call_operand.hbm [shape: f32[32,64], index: 1, kind: input, shape index: {}]   ;;  %s351_s2 = inlined_call_operand.vmem [shape: f32[1,64], index: 2, kind: input, shape index: {}]   ;;  %s352_s3 = inlined_call_operand.vmem [shape: f32[1,64], index: 3, kind: input, shape index: {}]   ;;  %s353_s4 = inlined_call_operand.vmem [shape: f32[1,64], index: 4, kind: input, shape index: {}]   ;;  %s354_s5 = inlined_call_operand.hbm [shape: f32[16,64], index: 5, kind: output, shape index: {}]  }
   0x1   :  { %11 = vsyncpa [#allocation6], 0 }
   0x2   :  { %12 = vsyncpa [#allocation4], 0  ;;  %s17_s20 = sshll.u32 %s349_s0, 4  ;;  %s280_s21 = smov [#allocation2]   ;;  %s18_s20 = int_to_ptr.hbm [resolvable:$true] %s17_s20 }
   0x3   :  { %s19_s22 = sshll.u32 %s280_s21, 4  ;;  %s30_s25 = sshll.u32 %s350_s1, 4  ;;  %s20_s22 = int_to_ptr.vmem [resolvable:$true] %s19_s22  ;;  %s31_s25 = int_to_ptr.hbm [resolvable:$true] %s30_s25 }
   0x4   :  { %s281_s26 = smov 128   ;;  %s282_s27 = smov 8  }
   0x5   :  { %25 = dma.hbm_to_vmem [thread:$0]  %s18_s20, 256, %s20_s22, [#allocation3], %s281_s26, %s281_s26, %s282_s27  }
   0x6   :  { %s283_s28 = smov [#allocation5]  }
   0x7   :  { %s32_s29 = sshll.u32 %s283_s28, 4  ;;  %s33_s29 = int_to_ptr.vmem [resolvable:$true] %s32_s29 }
   0x8   :  { %38 = dma.hbm_to_vmem [thread:$0]  %s31_s25, 512, %s33_s29, [#allocation6], %s281_s26, %s281_s26, %s282_s27  }
   0x9   :  { %274 = dma.done.wait [#allocation3], 256  }
   0xa   :  { %275 = vsyncadd [#allocation3], 4294967040 }
   0xb   :  { %276 = dma.done.wait [#allocation6], 512  }
   0xc   :  { %277 = vsyncadd [#allocation6], 4294966784  ;;  %v58_v0 = vld [vmem:[#allocation5 + $0x18] sm:$0xff]  ;;  %v57_v1 = vld [vmem:[#allocation5 + $0x10] sm:$0xff]  ;;  %vm63_vm0 = vcmask 261120   ;;  %vm95_vm1 = vcmask 523264  }
   0xd   :  { %82 = vmatpush.msra.mxu0 %v58_v0  ;;  %183 = vmatpush.msra.mxu1 %v58_v0  ;;  %v56_v2 = vld [vmem:[#allocation5 + $0x8] sm:$0xff]  ;;  %v55_v3 = vld [vmem:[#allocation5] sm:$0xff]  ;;  %v53_v4 = vld [vmem:[#allocation2] sm:$0xff]  ;;  %v284_v15 = vmov 64.0   ;;  %s167_s11 = sshll.u32 %s354_s5, 4  ;;  %s168_s11 = int_to_ptr.hbm [resolvable:$true] %s167_s11 }
   0xe   :  { %v54_v5 = vld [vmem:[#allocation2 + $0x8] sm:$0xff]  ;;  %v193_v6 = vld [vmem:[%s351_s2] ss:$0 sm:$0xff]  ;;  %196 = vrcp.f32 %v284_v15 }
   0xf   :  { %83 = vmatpush.msra.mxu0 %v57_v1  ;;  %184 = vmatpush.msra.mxu1 %v57_v1  ;;  %v194_v46 = vld [vmem:[%s352_s3] ss:$0 sm:$0xff]  ;;  %s285_s3 = smov [#allocation7]  }
  0x10   :  { %v195_v50 = vld [vmem:[%s353_s4] ss:$0 sm:$0xff]  ;;  %s165_s8 = sshll.u32 %s285_s3, 4  ;;  %s166_s8 = int_to_ptr.vmem [resolvable:$true] %s165_s8 }
  0x11   :  { %84 = vmatpush.msra.mxu0 %v56_v2  ;;  %185 = vmatpush.msra.mxu1 %v56_v2 }
  0x13   :  { %85 = vmatpush.msra.mxu0 %v55_v3  ;;  %186 = vmatpush.msra.mxu1 %v55_v3 }
  0x14   :  { %181 = vmatmul.msk.f32.vlgmr.msra.gmra.mxu0 %vm63_vm0, %v53_v4  ;;  %182 = vmatmul.msk.f32.vlgmr.msra.gmra.mxu1 %vm63_vm0, %v54_v5  ;;  %v197_v16 = vpop.eup %196 }
  0x15   :  { %v103_v17 = vmul.f32 64.0, %v197_v16  ;;  %vm107_vm2 = vweird.f32 %v197_v16 }
  0x17   :  { %v104_v18 = vsub.f32 1.0, %v103_v17 }
  0x19   :  { %v105_v19 = vmul.f32 %v197_v16, %v104_v18 }
  0x1b   :  { %v106_v20 = vadd.f32 %v197_v16, %v105_v19 }
  0x1d   :  { %v108_v21 = vsel %vm107_vm2, %v197_v16, %v106_v20 }
  0x91   :  { %v87_v7 = vpop.f32.mrf.mxu0  ;;  %v90_v8 = vpop.f32.mrf.mxu1 }
  0x92   :  { %v88_v9 = vadd.f32 %v193_v6, %v87_v7  ;;  %v91_v11 = vadd.f32 %v193_v6, %v90_v8 }
  0x94   :  { %v93_v10 = vmax.f32 %v88_v9, 0.0  ;;  %v94_v13 = vmax.f32 %v91_v11, 0.0 }
  0x96   :  { %v96_v12 = vsel %vm95_vm1, %v93_v10, 0.0  ;;  %v99_v14 = vsel %vm95_vm1, %v94_v13, 0.0 }
  0x97   :  { %97 = vadd.xlane.f32.xlu0 %v96_v12 }
  0x9f   :  { %100 = vadd.xlane.f32.xlu0 %v99_v14 }
 0x10a   :  { %v98_v22 = vpop.xlane.xlu0 %97 }
 0x10b   :  { %v109_v23 = vmul.f32 %v108_v21, %v98_v22 }
 0x10d   :  { %v111_v24 = vsub.f32 %v93_v10, %v109_v23 }
 0x10f   :  { %v113_v25 = vmul.f32 %v111_v24, %v111_v24 }
 0x111   :  { %v115_v26 = vsel %vm95_vm1, %v113_v25, 0.0 }
 0x112   :  { %116 = vadd.xlane.f32.xlu1 %v115_v26  ;;  %v101_v27 = vpop.xlane.xlu0 %100 }
 0x113   :  { %v110_v28 = vmul.f32 %v108_v21, %v101_v27 }
 0x115   :  { %v112_v29 = vsub.f32 %v94_v13, %v110_v28 }
 0x117   :  { %v114_v30 = vmul.f32 %v112_v29, %v112_v29 }
 0x119   :  { %v118_v31 = vsel %vm95_vm1, %v114_v30, 0.0 }
 0x11a   :  { %119 = vadd.xlane.f32.xlu1 %v118_v31 }
 0x185   :  { %v117_v32 = vpop.xlane.xlu1 %116 }
 0x186   :  { %v121_v33 = vmul.f32 %v117_v32, %v108_v21 }
 0x188   :  { %v123_v34 = vadd.f32 1e-05, %v121_v33 }
 0x18a   :  { %198 = vrsqrt.f32 %v123_v34  ;;  %vm131_vm4 = vweird.f32 %v123_v34 }
 0x18d   :  { %v120_v35 = vpop.xlane.xlu1 %119 }
 0x18e   :  { %v122_v36 = vmul.f32 %v120_v35, %v108_v21 }
 0x190   :  { %v199_v37 = vpop.eup %198  ;;  %v124_v38 = vadd.f32 1e-05, %v122_v36 }
 0x191   :  { %v126_v39 = vmul.f32 %v199_v37, %v123_v34  ;;  %vm132_vm3 = vweird.f32 %v199_v37 }
 0x192   :  { %200 = vrsqrt.f32 %v124_v38  ;;  %vm133_vm5 = vmor %vm131_vm4, %vm132_vm3  ;;  %vm141_vm7 = vweird.f32 %v124_v38 }
 0x193   :  { %v127_v40 = vmul.f32 %v199_v37, %v126_v39 }
 0x195   :  { %v128_v41 = vmul.f32 0.5, %v127_v40 }
 0x197   :  { %v129_v42 = vsub.f32 1.5, %v128_v41 }
 0x198   :  { %v201_v43 = vpop.eup %200 }
 0x199   :  { %v130_v44 = vmul.f32 %v199_v37, %v129_v42  ;;  %v136_v45 = vmul.f32 %v201_v43, %v124_v38  ;;  %vm142_vm6 = vweird.f32 %v201_v43 }
 0x19a   :  { %vm143_vm8 = vmor %vm141_vm7, %vm142_vm6 }
 0x19b   :  { %v134_v47 = vsel %vm133_vm5, %v199_v37, %v130_v44  ;;  %v137_v48 = vmul.f32 %v201_v43, %v136_v45 }
 0x19c   :  { %v145_v49 = vmul.f32 %v134_v47, %v111_v24 }
 0x19d   :  { %v138_v51 = vmul.f32 0.5, %v137_v48 }
 0x19e   :  { %v151_v52 = vmul.f32 %v194_v46, %v145_v49 }
 0x19f   :  { %v139_v53 = vsub.f32 1.5, %v138_v51 }
 0x1a0   :  { %v157_v54 = vadd.f32 %v195_v50, %v151_v52 }
 0x1a1   :  { %v140_v55 = vmul.f32 %v201_v43, %v139_v53 }
 0x1a2   :  { %159 = vst.msk [vmem:[#allocation7] sm:$0xff] %vm95_vm1, %v157_v54 }
 0x1a3   :  { %v144_v56 = vsel %vm143_vm8, %v201_v43, %v140_v55 }
 0x1a4   :  { %v146_v57 = vmul.f32 %v144_v56, %v112_v29 }
 0x1a6   :  { %v152_v58 = vmul.f32 %v194_v46, %v146_v57 }
 0x1a8   :  { %v158_v59 = vadd.f32 %v195_v50, %v152_v58 }
 0x1aa   :  { %160 = vst.msk [vmem:[#allocation7 + $0x8] sm:$0xff] %vm95_vm1, %v158_v59 }
 0x1ab   :  { %173 = dma.vmem_to_hbm [thread:$0]  %s166_s8, 256, %s168_s11, [#allocation4], %s281_s26, %s281_s26, %s282_s27  }
 0x1ac   :  { %278 = dma.done.wait [#allocation4], 256  }
 0x1ad   :  { %279 = vsyncadd [#allocation4], 4294967040 }
 0x1ae   :  { %178 = vsyncpa [#allocation3], 1 }
 0x1af   :  { %179 = vsyncpa [#allocation6], 1 }
 0x1b0   :  { %180 = vsyncpa [#allocation4], 1 }

</bundles_post_ra>
